<compile_context>
chip_gen: v7x
topology: tpu7x:2x2x1
jax: 0.10.0
libtpu: 0.0.40
codegen_flags: <defaults>
</compile_context>

<pallas_src>
import jax
import jax.numpy as jnp
from jax import lax
from jax.experimental import pallas as pl
from jax.experimental.pallas import tpu as pltpu


def gru_decode_kernel(ids_ref,      # (1, B, 1) int32  token ids for this step
                      tab_ref,      # (V, 3H)  f32     Emb @ W_ih^T + b_ih (+ b_hh r/z folded)
                      whh_ref,      # (H, 3H)  f32     W_hh^T (gates r|z|n along lanes)
                      bhh_ref,      # (1, 3H)  f32     [0, 0, b_hh_n]
                      h0_ref,       # (B, H)   f32     initial hidden
                      out_ref,      # (1, B, H) f32    hidden at this step
                      h_acc):       # (B, H)   f32     VMEM scratch, persists across steps
    t = pl.program_id(0)

    @pl.when(t == 0)
    def _():
        h_acc[...] = h0_ref[...]

    h = h_acc[...]
    B, H = h.shape
    V = tab_ref.shape[0]

    # Embedding gather as a one-hot matmul on the otherwise-idle MXU.
    ids = ids_ref[0]                                                    # (B, 1) int32
    one_hot = (ids == lax.broadcasted_iota(jnp.int32, (B, V), 1)).astype(jnp.float32)
    gx = jnp.dot(one_hot, tab_ref[...], preferred_element_type=jnp.float32)   # (B, 3H)

    # Fused hidden-state projection for all three gates.
    gh = jnp.dot(h, whh_ref[...], preferred_element_type=jnp.float32) + bhh_ref[...]

    # PyTorch GRUCell gate math (reset, update, new).
    r = jax.nn.sigmoid(gx[:, :H] + gh[:, :H])
    z = jax.nn.sigmoid(gx[:, H:2 * H] + gh[:, H:2 * H])
    n = jnp.tanh(gx[:, 2 * H:] + r * gh[:, 2 * H:])

    h_new = n + z * (h - n)                                             # == (1-z)*n + z*h
    h_acc[...] = h_new
    out_ref[0] = h_new


def prepare_decoder_params(params):
    """One-time prep (run at init, NOT per decode step):
    fold Embedding @ W_ih^T + biases into a single (V, 3H) gather table, pre-transpose
    W_hh into (H, 3H), and keep only b_hh_n as a separate bias row."""
    emb = params["embedding"]          # (V, V)
    wih = params["weight_ih"]          # (3H, V)
    whh = params["weight_hh"]          # (3H, H)
    bih = params["bias_ih"]            # (3H,)
    bhh = params["bias_hh"]            # (3H,)
    H = whh.shape[1]

    # b_hh for r/z gates can be folded into the per-token table; b_hh_n cannot
    # (PyTorch scales it by the reset gate inside the n-gate tanh).
    bhh_fold = jnp.concatenate([bhh[:2 * H], jnp.zeros((H,), jnp.float32)])
    bhh_sep = jnp.concatenate([jnp.zeros((2 * H,), jnp.float32), bhh[2 * H:]])

    return {
        "tab_cat": emb @ wih.T + bih + bhh_fold,       # (V, 3H)
        "whh_cat": whh.T,                              # (H, 3H)
        "bhh_cat": bhh_sep.reshape(1, 3 * H),          # (1, 3H)
    }


def converter_word_decoder_rnn_decode(ids_seq, h0, prepared):
    """In-kernel multi-step decode.
    ids_seq: (T, B) int32 token ids; h0: (B, H) f32.
    Returns (T, B, H) f32: hidden after each step (== module output at each step)."""
    T, B = ids_seq.shape
    H = h0.shape[1]
    V, H3 = prepared["tab_cat"].shape

    ids3 = ids_seq.reshape(T, B, 1)
    const = lambda shape: pl.BlockSpec(shape, lambda t: (0, 0))

    return pl.pallas_call(
        gru_decode_kernel,
        out_shape=jax.ShapeDtypeStruct((T, B, H), jnp.float32),
        grid_spec=pltpu.PrefetchScalarGridSpec(
            num_scalar_prefetch=0,
            grid=(T,),
            in_specs=[
                pl.BlockSpec((1, B, 1), lambda t: (t, 0, 0)),   # ids for step t
                const((V, H3)),                                 # fused gather table (resident)
                const((H, H3)),                                 # W_hh^T            (resident)
                const((1, H3)),                                 # b_hh_n row        (resident)
                const((B, H)),                                  # h0                (resident)
            ],
            out_specs=pl.BlockSpec((1, B, H), lambda t: (t, 0, 0)),
            scratch_shapes=[pltpu.VMEM((B, H), jnp.float32)],   # hidden carry
        ),
        compiler_params=pltpu.CompilerParams(
            dimension_semantics=("arbitrary",)),                # serial recurrence
    )(ids3, prepared["tab_cat"], prepared["whh_cat"], prepared["bhh_cat"], h0)


def converter_word_decoder_rnn(inp, hidden, prepared):
    """Exact module-forward semantics (one step). inp: (B,) int32; hidden: (B, H)."""
    return converter_word_decoder_rnn_decode(inp[None, :], hidden, prepared)[0]


def init_params(key, vocab_size, hidden_dim):
    """Deterministic synthetic parameters matching nn.Embedding + nn.GRUCell shapes."""
    k_emb, k_wih, k_whh, k_bih, k_bhh = jax.random.split(key, 5)
    bound = 1.0 / jnp.sqrt(hidden_dim)
    return {
        "embedding": jax.random.normal(k_emb, (vocab_size, vocab_size), jnp.float32),
        "weight_ih": jax.random.uniform(k_wih, (3 * hidden_dim, vocab_size),
                                        jnp.float32, -bound, bound),
        "weight_hh": jax.random.uniform(k_whh, (3 * hidden_dim, hidden_dim),
                                        jnp.float32, -bound, bound),
        "bias_ih": jax.random.uniform(k_bih, (3 * hidden_dim,), jnp.float32, -bound, bound),
        "bias_hh": jax.random.uniform(k_bhh, (3 * hidden_dim,), jnp.float32, -bound, bound),
    }


def _reference(inp, hidden, params):
    """Pure-JAX reference (PyTorch GRUCell semantics) for one step."""
    x = params["embedding"][inp]                                 # (B, V)
    gx = x @ params["weight_ih"].T + params["bias_ih"]
    gh = hidden @ params["weight_hh"].T + params["bias_hh"]
    H = hidden.shape[1]
    r = jax.nn.sigmoid(gx[:, :H] + gh[:, :H])
    z = jax.nn.sigmoid(gx[:, H:2 * H] + gh[:, H:2 * H])
    n = jnp.tanh(gx[:, 2 * H:] + r * gh[:, 2 * H:])
    return (1.0 - z) * n + z * hidden


if __name__ == "__main__":
    VOCAB = 16      # len(config['vocab'].vocab)
    HIDDEN = 32     # config['word_encoder_output_dim']
    BATCH = 4
    STEPS = 8

    key = jax.random.PRNGKey(0)
    k_p, k_i, k_h = jax.random.split(key, 3)

    params = init_params(k_p, VOCAB, HIDDEN)
    ids_seq = jax.random.randint(k_i, (STEPS, BATCH), 0, VOCAB, dtype=jnp.int32)
    h0 = jax.random.normal(k_h, (BATCH, HIDDEN), jnp.float32)

    # One-time prep, hoisted out of the decode loop.
    prepared = jax.tree_util.tree_map(jax.block_until_ready,
                                      prepare_decoder_params(params))

    # --- Single step: exact module.forward(inp, hidden) semantics -------------
    out1 = jax.block_until_ready(converter_word_decoder_rnn(ids_seq[0], h0, prepared))
    ref1 = _reference(ids_seq[0], h0, params)
    assert out1.shape == (BATCH, HIDDEN)
    assert jnp.allclose(out1, ref1, atol=1e-5, rtol=1e-5), "single-step mismatch"

    # --- Multi-step: in-kernel decode loop with VMEM-resident weights ---------
    outs = jax.block_until_ready(converter_word_decoder_rnn_decode(ids_seq, h0, prepared))
    h = h0
    refs = []
    for t in range(STEPS):
        h = _reference(ids_seq[t], h, params)
        refs.append(h)
    refs = jnp.stack(refs)
    assert outs.shape == (STEPS, BATCH, HIDDEN)
    assert jnp.allclose(outs, refs, atol=1e-4, rtol=1e-4), "multi-step mismatch"

    print("KERNEL_OK")
</pallas_src>

<mosaic_0001>
module attributes {stable_mosaic.version = 11 : i64} {
  func.func @gru_decode_kernel(%arg0: i32, %arg1: memref<1x4x1xi32, #tpu.memory_space<vmem>>, %arg2: memref<16x96xf32, #tpu.memory_space<vmem>>, %arg3: memref<32x96xf32, #tpu.memory_space<vmem>>, %arg4: memref<1x96xf32, #tpu.memory_space<vmem>>, %arg5: memref<4x32xf32, #tpu.memory_space<vmem>>, %arg6: memref<1x4x32xf32, #tpu.memory_space<vmem>>, %arg7: memref<4x32xf32, #tpu.memory_space<vmem>>) attributes {dimension_semantics = [#tpu.dimension_semantics<arbitrary>], iteration_bounds = array<i64: 1>, scalar_prefetch = 0 : i64, scratch_operands = 1 : i64, tpu.core_type = #tpu.core_type<tc>, window_params = [{transform_indices = @transform_0, window_bounds = array<i64: 1, 4, 1>}, {pipeline_mode = #tpu.pipeline_mode<synchronous>, transform_indices = @transform_1, window_bounds = array<i64: 16, 96>}, {pipeline_mode = #tpu.pipeline_mode<synchronous>, transform_indices = @transform_2, window_bounds = array<i64: 32, 96>}, {pipeline_mode = #tpu.pipeline_mode<synchronous>, transform_indices = @transform_3, window_bounds = array<i64: 1, 96>}, {pipeline_mode = #tpu.pipeline_mode<synchronous>, transform_indices = @transform_4, window_bounds = array<i64: 4, 32>}, {transform_indices = @transform_5, window_bounds = array<i64: 1, 4, 32>}]} {
    %c0_i32 = arith.constant 0 : i32
    %0 = arith.cmpi eq, %arg0, %c0_i32 : i32
    %1 = arith.extui %0 : i1 to i32
    %c0_i32_0 = arith.constant 0 : i32
    %2 = arith.cmpi ne, %1, %c0_i32_0 : i32
    scf.if %2 {
      %c0_19 = arith.constant 0 : index
      %c0_20 = arith.constant 0 : index
      %46 = vector.load %arg5[%c0_19, %c0_20] : memref<4x32xf32, #tpu.memory_space<vmem>>, vector<4x32xf32>
      %c0_21 = arith.constant 0 : index
      %c0_22 = arith.constant 0 : index
      %47 = vector.load %arg7[%c0_21, %c0_22] : memref<4x32xf32, #tpu.memory_space<vmem>>, vector<4x32xf32>
      tpu.vector_store %arg7[%c0_21, %c0_22], %46 {strides = array<i32>} : memref<4x32xf32, #tpu.memory_space<vmem>>, vector<4x32xf32>,
    } else {
    }
    %c0 = arith.constant 0 : index
    %c0_1 = arith.constant 0 : index
    %3 = vector.load %arg7[%c0, %c0_1] : memref<4x32xf32, #tpu.memory_space<vmem>>, vector<4x32xf32>
    %c0_2 = arith.constant 0 : index
    %c0_3 = arith.constant 0 : index
    %c0_4 = arith.constant 0 : index
    %4 = vector.load %arg1[%c0_2, %c0_3, %c0_4] : memref<1x4x1xi32, #tpu.memory_space<vmem>>, vector<1x4x1xi32>
    %5 = vector.shape_cast %4 : vector<1x4x1xi32> to vector<4x1xi32>
    %6 = tpu.iota {dimensions = array<i32: 1>} : vector<4x16xi32>
    %7 = vector.broadcast %5 : vector<4x1xi32> to vector<4x16xi32>
    %8 = arith.cmpi eq, %7, %6 : vector<4x16xi32>
    %9 = arith.extui %8 : vector<4x16xi1> to vector<4x16xi32>
    %10 = arith.sitofp %9 : vector<4x16xi32> to vector<4x16xf32>
    %c0_5 = arith.constant 0 : index
    %c0_6 = arith.constant 0 : index
    %11 = vector.load %arg2[%c0_5, %c0_6] : memref<16x96xf32, #tpu.memory_space<vmem>>, vector<16x96xf32>
    %cst = arith.constant dense<0.000000e+00> : vector<4x96xf32>
    %12 = tpu.matmul %10, %11, %cst {dimension_numbers = #tpu.dot_dimension_numbers<[1], [0], [0], [1], [0, 0, 1, 1], [], []>} : vector<4x16xf32>, vector<16x96xf32>, vector<4x96xf32> -> vector<4x96xf32>
    %c0_7 = arith.constant 0 : index
    %c0_8 = arith.constant 0 : index
    %13 = vector.load %arg3[%c0_7, %c0_8] : memref<32x96xf32, #tpu.memory_space<vmem>>, vector<32x96xf32>
    %cst_9 = arith.constant dense<0.000000e+00> : vector<4x96xf32>
    %14 = tpu.matmul %3, %13, %cst_9 {dimension_numbers = #tpu.dot_dimension_numbers<[1], [0], [0], [1], [0, 0, 1, 1], [], []>} : vector<4x32xf32>, vector<32x96xf32>, vector<4x96xf32> -> vector<4x96xf32>
    %c0_10 = arith.constant 0 : index
    %c0_11 = arith.constant 0 : index
    %15 = vector.load %arg4[%c0_10, %c0_11] : memref<1x96xf32, #tpu.memory_space<vmem>>, vector<1x96xf32>
    %16 = vector.broadcast %15 : vector<1x96xf32> to vector<4x96xf32>
    %17 = arith.addf %14, %16 : vector<4x96xf32>
    %18 = vector.extract_strided_slice %12 {offsets = [0, 0], sizes = [4, 32], strides = [1, 1]} : vector<4x96xf32> to vector<4x32xf32>
    %19 = vector.extract_strided_slice %17 {offsets = [0, 0], sizes = [4, 32], strides = [1, 1]} : vector<4x96xf32> to vector<4x32xf32>
    %20 = arith.addf %18, %19 : vector<4x32xf32>
    %21 = arith.negf %20 : vector<4x32xf32>
    %22 = math.exp %21 : vector<4x32xf32>
    %cst_12 = arith.constant 1.000000e+00 : f32
    %23 = vector.broadcast %cst_12 : f32 to vector<4x32xf32>
    %24 = arith.addf %23, %22 : vector<4x32xf32>
    %25 = arith.divf %23, %24 : vector<4x32xf32>
    %26 = vector.extract_strided_slice %12 {offsets = [0, 32], sizes = [4, 32], strides = [1, 1]} : vector<4x96xf32> to vector<4x32xf32>
    %27 = vector.extract_strided_slice %17 {offsets = [0, 32], sizes = [4, 32], strides = [1, 1]} : vector<4x96xf32> to vector<4x32xf32>
    %28 = arith.addf %26, %27 : vector<4x32xf32>
    %29 = arith.negf %28 : vector<4x32xf32>
    %30 = math.exp %29 : vector<4x32xf32>
    %cst_13 = arith.constant 1.000000e+00 : f32
    %31 = vector.broadcast %cst_13 : f32 to vector<4x32xf32>
    %32 = arith.addf %31, %30 : vector<4x32xf32>
    %33 = arith.divf %31, %32 : vector<4x32xf32>
    %34 = vector.extract_strided_slice %12 {offsets = [0, 64], sizes = [4, 32], strides = [1, 1]} : vector<4x96xf32> to vector<4x32xf32>
    %35 = vector.extract_strided_slice %17 {offsets = [0, 64], sizes = [4, 32], strides = [1, 1]} : vector<4x96xf32> to vector<4x32xf32>
    %36 = arith.mulf %25, %35 : vector<4x32xf32>
    %37 = arith.addf %34, %36 : vector<4x32xf32>
    %38 = math.tanh %37 : vector<4x32xf32>
    %39 = arith.subf %3, %38 : vector<4x32xf32>
    %40 = arith.mulf %33, %39 : vector<4x32xf32>
    %41 = arith.addf %38, %40 : vector<4x32xf32>
    %c0_14 = arith.constant 0 : index
    %c0_15 = arith.constant 0 : index
    %42 = vector.load %arg7[%c0_14, %c0_15] : memref<4x32xf32, #tpu.memory_space<vmem>>, vector<4x32xf32>
    tpu.vector_store %arg7[%c0_14, %c0_15], %41 {strides = array<i32>} : memref<4x32xf32, #tpu.memory_space<vmem>>, vector<4x32xf32>,
    %c0_16 = arith.constant 0 : index
    %c0_17 = arith.constant 0 : index
    %c0_18 = arith.constant 0 : index
    %43 = vector.load %arg6[%c0_16, %c0_17, %c0_18] : memref<1x4x32xf32, #tpu.memory_space<vmem>>, vector<1x4x32xf32>
    %44 = vector.shape_cast %43 : vector<1x4x32xf32> to vector<4x32xf32>
    %45 = vector.shape_cast %41 : vector<4x32xf32> to vector<1x4x32xf32>
    tpu.vector_store %arg6[%c0_16, %c0_17, %c0_18], %45 {strides = array<i32>} : memref<1x4x32xf32, #tpu.memory_space<vmem>>, vector<1x4x32xf32>,
    return
  }
  func.func @transform_0(%arg0: i32) -> (i32, i32, i32) {
    %c0_i32 = arith.constant 0 : i32
    %c0_i32_0 = arith.constant 0 : i32
    %c0_i32_1 = arith.constant 0 : i32
    return %arg0, %c0_i32, %c0_i32_0 : i32, i32, i32
  }
  func.func @transform_1(%arg0: i32) -> (i32, i32) {
    %c0_i32 = arith.constant 0 : i32
    %c0_i32_0 = arith.constant 0 : i32
    %c0_i32_1 = arith.constant 0 : i32
    return %c0_i32, %c0_i32_0 : i32, i32
  }
  func.func @transform_2(%arg0: i32) -> (i32, i32) {
    %c0_i32 = arith.constant 0 : i32
    %c0_i32_0 = arith.constant 0 : i32
    %c0_i32_1 = arith.constant 0 : i32
    return %c0_i32, %c0_i32_0 : i32, i32
  }
  func.func @transform_3(%arg0: i32) -> (i32, i32) {
    %c0_i32 = arith.constant 0 : i32
    %c0_i32_0 = arith.constant 0 : i32
    %c0_i32_1 = arith.constant 0 : i32
    return %c0_i32, %c0_i32_0 : i32, i32
  }
  func.func @transform_4(%arg0: i32) -> (i32, i32) {
    %c0_i32 = arith.constant 0 : i32
    %c0_i32_0 = arith.constant 0 : i32
    %c0_i32_1 = arith.constant 0 : i32
    return %c0_i32, %c0_i32_0 : i32, i32
  }
  func.func @transform_5(%arg0: i32) -> (i32, i32, i32) {
    %c0_i32 = arith.constant 0 : i32
    %c0_i32_0 = arith.constant 0 : i32
    %c0_i32_1 = arith.constant 0 : i32
    return %arg0, %c0_i32, %c0_i32_0 : i32, i32, i32
  }
}

</mosaic_0001>

<bundles_post_ra>
// kernel: tpu_custom_call.1
= control target key start
LH: loop header
LB: loop body
LE: loop exit
PB: predicated region body
PF: predicated region fallthrough
CT: control target
= control target key end

     0   :  { %10 = vsyncpa [#allocation4], 0  ;;  %s502_s0 = inlined_call_operand.vmem [shape: s32[1,4,1], index: 0, kind: input, shape index: {}]   ;;  %s503_s1 = inlined_call_operand.hbm [shape: f32[16,96], index: 1, kind: input, shape index: {}]   ;;  %s504_s2 = inlined_call_operand.hbm [shape: f32[32,96], index: 2, kind: input, shape index: {}]   ;;  %s505_s3 = inlined_call_operand.vmem [shape: f32[1,96], index: 3, kind: input, shape index: {}]   ;;  %s506_s4 = inlined_call_operand.vmem [shape: f32[4,32], index: 4, kind: input, shape index: {}]   ;;  %s507_s5 = inlined_call_operand.hbm [shape: f32[1,4,32], index: 5, kind: output, shape index: {}]  }
   0x1   :  { %11 = vsyncpa [#allocation7], 0 }
   0x2   :  { %12 = vsyncpa [#allocation5], 0  ;;  %s413_s18 = smov [#allocation3]   ;;  %s341_s22 = scalar_lea.hbm %s503_s1, 256 }
   0x3   :  { %s20_s19 = sshll.u32 %s413_s18, 4  ;;  %p342_p0 = scmp.ne.s32.totalorder %s503_s1, %s341_s22  ;;  %s21_s19 = int_to_ptr.vmem [resolvable:$true] %s20_s19 }
   0x4   :  { %p345_p1 = scmp.lt.u32.totalorder %s341_s22, %s503_s1 }
   0x6   :  { %p347_p2 = pnand %p345_p1, %p342_p0 }
   0x8   :  { %350 = shalt.err (!%p347_p2)
}
   0x9   :  { %s351_s27 = scalar_lea.vmem %s21_s19, 256  ;;  %p356_p4 = scmp.lt.s32.totalorder %s21_s19, %s21_s19 }
   0xa   :  { %p352_p3 = scmp.ne.s32.totalorder %s21_s19, %s351_s27  ;;  %p357_p5 = scmp.lt.s32.totalorder %s351_s27, %s351_s27 }
   0xc   :  { %p358_p6 = por %p357_p5, %p356_p4 }
   0xe   :  { %p359_p7 = pnand %p358_p6, %p352_p3 }
  0x10   :  { %362 = shalt.err (!%p359_p7)
}
  0x11   :  { %s414_s28 = smov 128   ;;  %s415_s29 = smov 8  }
  0x12   :  { %26 = dma.hbm_to_vmem [thread:$0]  %s503_s1, 256, %s21_s19, [#allocation4], %s414_s28, %s414_s28, %s415_s29  }
  0x13   :  { %s416_s7 = smov [#allocation6]   ;;  %s363_s11 = scalar_lea.hbm %s504_s2, 512 }
  0x14   :  { %s32_s8 = sshll.u32 %s416_s7, 4  ;;  %p364_p8 = scmp.ne.s32.totalorder %s504_s2, %s363_s11  ;;  %s33_s8 = int_to_ptr.vmem [resolvable:$true] %s32_s8 }
  0x15   :  { %p367_p9 = scmp.lt.u32.totalorder %s363_s11, %s504_s2 }
  0x17   :  { %p369_p10 = pnand %p367_p9, %p364_p8 }
  0x19   :  { %372 = shalt.err (!%p369_p10)
}
  0x1a   :  { %s373_s16 = scalar_lea.vmem %s33_s8, 512  ;;  %p378_p12 = scmp.lt.s32.totalorder %s33_s8, %s33_s8 }
  0x1b   :  { %p374_p11 = scmp.ne.s32.totalorder %s33_s8, %s373_s16  ;;  %p379_p13 = scmp.lt.s32.totalorder %s373_s16, %s373_s16 }
  0x1d   :  { %p380_p0 = por %p379_p13, %p378_p12 }
  0x1f   :  { %p381_p1 = pnand %p380_p0, %p374_p11 }
  0x21   :  { %384 = shalt.err (!%p381_p1)
}
  0x22   :  { %38 = dma.hbm_to_vmem [thread:$0]  %s504_s2, 512, %s33_s8, [#allocation7], %s414_s28, %s414_s28, %s415_s29  }
  0x23   :  { %407 = dma.done.wait [#allocation4], 256  }
  0x24   :  { %408 = vsyncadd [#allocation4], 4294967040 }
  0x25   :  { %409 = dma.done.wait [#allocation7], 512  }
  0x26   :  { %410 = vsyncadd [#allocation7], 4294966784  ;;  %v417_v0 = vmov 0   ;;  %v418_v1 = vmov 0.0|0.0   ;;  %vm419_vm0 = vmmov 0   ;;  %v420_v2 = vmov 0.0  }
  0x27   :  { %334 = vset.pattern.permute.xlu0 %v417_v0  ;;  %317 = vmatprep.subr.bf16.mxu1 %v418_v1  ;;  %vm54_vm1 = vcmask 257024   ;;  %v57_v3 = vld [vmem:[%s502_s0] sm:$0xf]  ;;  %v143_v5 = vld [vmem:[#allocation6 + $0x8] sm:$0xff]  ;;  %v144_v7 = vld [vmem:[#allocation6 + $0x10] sm:$0xff]  ;;  %vm153_vm2 = vcmask 261120   ;;  %v58_v15 = vlaneseq }
  0x28   :  { %311 = vmatprep.mubr.msk.f32.mxu1 %vm419_vm0, %v420_v2  ;;  %314 = vmatprep.subr.bf16.mxu0 %v418_v1  ;;  %v142_v4 = vld [vmem:[#allocation6] sm:$0xff]  ;;  %v145_v8 = vld [vmem:[#allocation6 + $0x18] sm:$0xff]  ;;  %v66_v10 = vld [vmem:[#allocation3] sm:$0xff]  ;;  %vm68_vm3 = vcmask 130048   ;;  %s421_s21 = smov 64   ;;  %s423_s22 = smov [#allocation8]  }
  0x29   :  { %300 = vmatprep.mubr.msk.f32.mxu0 %vm419_vm0, %v420_v2  ;;  %61 = vperm.xlu0 %334, %v57_v3   ;;  %v318_v6 = vpack.c.bf16 %v143_v5, %v142_v4  ;;  %v53_v9 = vld [vmem:[%s506_s4] sm:$0xf]  ;;  %v67_v11 = vld [vmem:[#allocation3 + $0x8] sm:$0xff]  ;;  %v321_v12 = vpack.c.bf16 %v145_v8, %v144_v7  ;;  %v59_v16 = vand.u32 127, %v58_v15  ;;  %s273_s23 = sshll.u32 %s423_s22, 4  ;;  %s274_s23 = int_to_ptr.vmem [resolvable:$true] %s273_s23 }
  0x2a   :  { %55 = vst.msk [vmem:[#allocation2] sm:$0xf] %vm54_vm1, %v53_v9  ;;  %v315_v13 = vpack.c.bf16 %v67_v11, %v66_v10  ;;  %v285_v19 = vld [vmem:[%s505_s3] ss:$0 sm:$0xff]  ;;  %s422_s3 = smov 32   ;;  %s385_s24 = scalar_lea.vmem %s274_s23, 64 }
  0x2b   :  { %319 = vmatpush3.bf16.msra.mxu1 %v318_v6  ;;  %p386_p2 = scmp.ne.s32.totalorder %s274_s23, %s385_s24  ;;  %p390_p3 = scmp.lt.s32.totalorder %s274_s23, %s274_s23 }
  0x2c   :  { %320 = vmatprep.subr.bf16.mxu1 %v418_v1  ;;  %316 = vmatpush3.bf16.msra.mxu0 %v315_v13  ;;  %p391_p4 = scmp.lt.s32.totalorder %s385_s24, %s385_s24 }
  0x2e   :  { %p392_p5 = por %p391_p4, %p390_p3 }
  0x2f   :  { %322 = vmatpush3.bf16.msra.mxu1 %v321_v12 }
  0x30   :  { %p393_p6 = pnand %p392_p5, %p386_p2 }
  0x31   :  { %v56_v14 = vld [vmem:[#allocation2] sm:$0xf] }
  0x32   :  { %312 = vmatmul.mubr.msk.f32.vlgmr.msra.gmra.mrb[0].mxu1 %vm153_vm2, %v56_v14 }
  0xa8   :  { %v62_v17 = vpop.permute.xlu0 %61 }
  0xa9   :  { %vm63_vm4 = vcmp.eq.s32.totalorder %v62_v17, %v59_v16 }
  0xaa   :  { %v283_v18 = vsel %vm63_vm4, 1.0, %v420_v2 }
  0xab   :  { %301 = vmatmul.mubr.msk.f32.vlgmr.msra.gmra.mrb[0].mxu0 %vm68_vm3, %v283_v18 }
 0x105   :  { %v223_v20 = vpop.f32.mrb[0].mxu1 }
 0x106   :  { %v224_v21 = vadd.f32 %v285_v19, %v223_v20  ;;  %v313_v22 = vpop.f32.mrb[1].mxu1 }
 0x108   :  { %235 = vrot.lane.b32.xlu0 %v224_v21, %s421_s21 }
 0x17a   :  { %v236_v29 = vpop.permute.xlu0 %235 }
 0x17e   :  { %v138_v23 = vpop.f32.mrb[0].mxu0 }
 0x17f   :  { %v227_v24 = vadd.f32 %v224_v21, %v138_v23  ;;  %v302_v25 = vpop.f32.mrb[1].mxu0 }
 0x181   :  { %v287_v26 = vmul.f32 -1.442695, %v227_v24 }
 0x183   :  { %335 = vpow2.f32 %v287_v26 }
 0x18d   :  { %v336_v27 = vpop.eup %335 }
 0x18e   :  { %v231_v28 = vadd.f32 1.0, %v336_v27 }
 0x190   :  { %337 = vrcp.f32 %v231_v28 }
 0x19a   :  { %v338_v30 = vpop.eup %337 }
 0x19b   :  { %v238_v31 = vmul.f32 %v338_v30, %v236_v29 }
 0x19d   :  { %240 = vrot.lane.b32.xlu1 %v238_v31, %s421_s21 }
 0x20f   :  { %v241_v32 = vpop.permute.xlu1 %240 }
 0x210   :  { %v243_v33 = vadd.f32 %v241_v32, %v138_v23 }
 0x212   :  { %339 = vtanh.f32 %v243_v33 }
 0x21c   :  { %v340_v34 = vpop.eup %339 }
 0x21d   :  { %246 = vrot.lane.b32.xlu1 %v340_v34, %s421_s21 }
 0x28f   :  { %v247_v35 = vpop.permute.xlu1 %246 }
 0x290   :  { %v249_v36 = vsub.f32 %v56_v14, %v247_v35 }
 0x292   :  { %251 = vrot.lane.b32.xlu0 %v249_v36, %s422_s3 }
 0x304   :  { %v252_v37 = vpop.permute.xlu0 %251 }
 0x305   :  { %v254_v38 = vmul.f32 %v338_v30, %v252_v37 }
 0x307   :  { %256 = vrot.lane.b32.xlu1 %v254_v38, %s422_s3 }
 0x379   :  { %v257_v39 = vpop.permute.xlu1 %256 }
 0x37a   :  { %v259_v40 = vadd.f32 %v340_v34, %v257_v39 }
 0x37c   :  { %261 = vrot.lane.b32.xlu0 %v259_v40, %s421_s21 }
 0x3ee   :  { %v262_v41 = vpop.permute.xlu0 %261 }
 0x3ef   :  { %265 = vst.msk [vmem:[#allocation2] sm:$0xf] %vm54_vm1, %v262_v41  ;;  %266 = vst.msk [vmem:[#allocation8] sm:$0xf] %vm54_vm1, %v262_v41 }
 0x3f0   :  { %396 = shalt.err (!%p393_p6)
}
 0x3f1   :  { %s397_s27 = scalar_lea.hbm %s507_s5, 64 }
 0x3f2   :  { %p398_p7 = scmp.ne.s32.totalorder %s507_s5, %s397_s27  ;;  %p401_p8 = scmp.lt.u32.totalorder %s397_s27, %s507_s5 }
 0x3f4   :  { %p403_p9 = pnand %p401_p8, %p398_p7 }
 0x3f6   :  { %406 = shalt.err (!%p403_p9)
}
 0x3f7   :  { %276 = dma.vmem_to_hbm [thread:$0]  %s274_s23, 64, %s507_s5, [#allocation5]  }
 0x3f8   :  { %411 = dma.done.wait [#allocation5], 64  }
 0x3f9   :  { %412 = vsyncadd [#allocation5], 4294967232 }
 0x3fa   :  { %280 = vsyncpa [#allocation4], 1 }
 0x3fb   :  { %281 = vsyncpa [#allocation7], 1 }
 0x3fc   :  { %282 = vsyncpa [#allocation5], 1 }

</bundles_post_ra>
